<compile_context>
chip_gen: v7x
topology: tpu7x:2x2x1
jax: 0.10.0
libtpu: 0.0.40
codegen_flags: <defaults>
</compile_context>

<pallas_src>
import jax
import jax.numpy as jnp
from jax import lax
from jax.experimental import pallas as pl
from jax.experimental.pallas import tpu as pltpu


def _round_up(x, m):
    return ((x + m - 1) // m) * m


def _default_carry_dtype(matmul_dtype):
    """bf16 inter-layer carry on v6e/v7x; f32 carry on v2-v5 (no bf16 VPU)."""
    if jnp.dtype(matmul_dtype) == jnp.dtype(jnp.float32):
        return jnp.float32
    try:
        kind = jax.devices()[0].device_kind.lower()
    except Exception:
        return jnp.float32
    if any(tag in kind for tag in ("v2", "v3", "v4", "v5")):
        return jnp.float32
    return matmul_dtype


def _make_q_kernel(num_hidden, matmul_dtype, carry_dtype, activation):
    """Fused MLP: `num_hidden` hidden layers (activation) + scalar head.

    The head is computed as a contraction of w_last (1, H) against h
    (tile_m, H) over their last axes (the same MXU pattern as q @ k.T in
    attention), which directly emits a lane-dense (1, tile_m) row of Q values.
    """

    def kernel(x_ref, *refs):
        o_ref = refs[-1]
        wb = refs[:-1]                            # [w0, b0, ..., w_last, b_last]
        h = x_ref[...].astype(matmul_dtype)       # (tile_m, in_dim)
        for j in range(num_hidden):
            lhs = h if h.dtype == matmul_dtype else h.astype(matmul_dtype)
            w = wb[2 * j][...]                    # (in_j, out_j), pre-cast bf16
            b = wb[2 * j + 1][...]                # (1, out_j), f32
            y = jnp.dot(lhs, w, preferred_element_type=jnp.float32) + b
            h = activation(y).astype(carry_dtype)
        lhs = h if h.dtype == matmul_dtype else h.astype(matmul_dtype)
        # (1, H) x (tile_m, H), contracting both last dims -> (1, tile_m).
        q = lax.dot_general(wb[-2][...], lhs, (((1,), (1,)), ((), ())),
                            preferred_element_type=jnp.float32)
        q = q + wb[-1][...]                       # (1, 1) f32 bias, broadcasts
        o_ref[...] = q.astype(o_ref.dtype)

    return kernel


def _pick_tile_m(n, requested):
    """Row-tile: large (few grid steps), multiple of 256 so the lane-dense
    output block stays 128-aligned, and >=2 tiles for big batches so v7x's two
    TensorCores both get work.  Small batches use a single full block."""
    req = max(256, (int(requested) // 256) * 256)
    if n >= 512:
        req = min(req, _round_up(pl.cdiv(n, 2), 256))
    if n <= req:
        return n                     # single block: block dims == array dims
    return req


def _run_q_kernel(x_flat, weights, biases, *, tile_m, matmul_dtype, carry_dtype,
                  activation):
    """x_flat: (N, in_dim) f32 -> (N,) f32 Q values.

    weights: [W_0 (in, h0), ..., W_{L-2} (h, h'), W_last (1, h_last)] already
             cast to the matmul dtype on the host.
    biases : [(1, h0) f32, ..., (1, 1) f32].
    """
    n, in_dim = x_flat.shape
    num_hidden = len(weights) - 1
    tm = _pick_tile_m(n, tile_m)
    num_tiles = pl.cdiv(n, tm)

    # x streams over row tiles (double-buffered).  No wrapper-side jnp.pad:
    # the ragged last tile reads garbage past N (rows are independent) and the
    # corresponding out-of-range output lanes are dropped.
    in_specs = [pl.BlockSpec((tm, in_dim), lambda i: (i, 0))]
    args = [x_flat]
    # Weights/biases: constant index_map -> DMA'd once, VMEM-resident across
    # all grid steps.
    for w, b in zip(weights, biases):
        in_specs.append(pl.BlockSpec(w.shape, lambda i: (0, 0)))
        in_specs.append(pl.BlockSpec(b.shape, lambda i: (0, 0)))
        args.append(w)
        args.append(b)

    # Lane-dense output: a single row of Q values, tiled along lanes.
    out_specs = pl.BlockSpec((1, tm), lambda i: (0, i))

    out = pl.pallas_call(
        _make_q_kernel(num_hidden, matmul_dtype, carry_dtype, activation),
        out_shape=jax.ShapeDtypeStruct((1, n), jnp.float32),
        grid=(num_tiles,),
        in_specs=in_specs,
        out_specs=out_specs,
        compiler_params=pltpu.CompilerParams(
            dimension_semantics=("parallel",),     # shard row tiles over TCs (v7x)
            vmem_limit_bytes=32 * 1024 * 1024,     # comfortable on v5e/v6e/v7x
        ),
    )(*args)
    return out[0]                                  # (N,)


def _linear_init(key, fan_in, fan_out):
    """PyTorch nn.Linear default init: U(-1/sqrt(fan_in), 1/sqrt(fan_in))."""
    kw, kb = jax.random.split(key)
    bound = 1.0 / float(fan_in) ** 0.5
    w = jax.random.uniform(kw, (fan_in, fan_out), jnp.float32, -bound, bound)
    b = jax.random.uniform(kb, (1, fan_out), jnp.float32, -bound, bound)
    return w, b


class MLPQFunctionPallas:
    """Pallas-TPU MLPQFunction: Q(s, a) MLP with ReLU hiddens and scalar head."""

    def __init__(self, obs_dim, act_dim, hidden_sizes=(256, 256),
                 activation=jax.nn.relu, key=None,
                 tile_m=1024, matmul_dtype=jnp.bfloat16, carry_dtype=None):
        # For best MXU utilization keep hidden_sizes multiples of 128 (256 is
        # ideal); matmul_dtype=jnp.float32 is the full-precision escape hatch.
        self.obs_dim = obs_dim
        self.act_dim = act_dim
        self.hidden_sizes = tuple(hidden_sizes)
        self.activation = activation
        self.tile_m = tile_m
        self.matmul_dtype = matmul_dtype
        self.carry_dtype = (_default_carry_dtype(matmul_dtype)
                            if carry_dtype is None else carry_dtype)
        if key is None:
            key = jax.random.PRNGKey(0)
        sizes = [obs_dim + act_dim] + list(hidden_sizes) + [1]
        keys = jax.random.split(key, len(sizes) - 1)
        # f32 masters (used by the reference / would be used for training).
        self.weights, self.biases = [], []
        for k, fi, fo in zip(keys, sizes[:-1], sizes[1:]):
            w, b = _linear_init(k, fi, fo)
            self.weights.append(w)
            self.biases.append(b)
        # Kernel-side copies: hidden weights pre-cast once to the matmul dtype;
        # the final (h_last, 1) weight is stored transposed as (1, h_last) so
        # the head matmul emits a lane-dense row directly.
        self._kernel_weights = [w.astype(matmul_dtype) for w in self.weights[:-1]]
        self._kernel_weights.append(self.weights[-1].T.astype(matmul_dtype))
        self._kernel_biases = [b.astype(jnp.float32) for b in self.biases]

    def forward(self, obs, act, n_sample=1):
        obs = jnp.asarray(obs, jnp.float32)
        act = jnp.asarray(act, jnp.float32)
        if n_sample > 1:
            obs = jnp.repeat(obs[:, None, :], n_sample, axis=1)
            assert obs.ndim == 3
        x = jnp.concatenate([act, obs], axis=-1)       # PyTorch order: [act, obs]
        lead_shape = x.shape[:-1]
        x_flat = x.reshape(-1, x.shape[-1])
        q = _run_q_kernel(x_flat, self._kernel_weights, self._kernel_biases,
                          tile_m=self.tile_m, matmul_dtype=self.matmul_dtype,
                          carry_dtype=self.carry_dtype,
                          activation=self.activation)
        # q is (N,) == (..., 1) already squeezed once.
        q = q.reshape(lead_shape)
        # Second torch-style squeeze(-1): only drops a trailing size-1 dim.
        if q.ndim > 0 and q.shape[-1] == 1:
            q = jnp.squeeze(q, axis=-1)
        return q

    __call__ = forward


def _reference_q(obs, act, weights, biases, activation, n_sample=1):
    """Pure-JAX f32 reference for correctness checking."""
    obs = jnp.asarray(obs, jnp.float32)
    act = jnp.asarray(act, jnp.float32)
    if n_sample > 1:
        obs = jnp.repeat(obs[:, None, :], n_sample, axis=1)
    h = jnp.concatenate([act, obs], axis=-1)
    for j, (w, b) in enumerate(zip(weights, biases)):
        h = h @ w + b
        if j < len(weights) - 1:
            h = activation(h)
    q = jnp.squeeze(h, axis=-1)
    if q.ndim > 0 and q.shape[-1] == 1:
        q = jnp.squeeze(q, axis=-1)
    return q


if __name__ == "__main__":
    key = jax.random.PRNGKey(0)
    k_init, k_obs, k_act1, k_act_mp, k_obs2, k_act2 = jax.random.split(key, 6)

    obs_dim = 8
    act_dim = 4
    hidden = (32, 32)          # small hidden sizes for the test
    batch = 2
    n_sample = 8

    qf = MLPQFunctionPallas(obs_dim=obs_dim, act_dim=act_dim,
                            hidden_sizes=hidden, key=k_init)

    obs = jax.random.normal(k_obs, (batch, obs_dim), jnp.float32)

    # 1) single-sample path: act (B, act_dim) -> q (B,)
    act1 = jax.random.normal(k_act1, (batch, act_dim), jnp.float32)
    q1 = qf(obs, act1, n_sample=1)
    jax.block_until_ready(q1)
    assert q1.shape == (batch,), q1.shape
    ref1 = _reference_q(obs, act1, qf.weights, qf.biases, qf.activation, 1)
    assert jnp.allclose(q1, ref1, atol=5e-2, rtol=5e-2), (q1, ref1)

    # 2) multi-sample path: obs broadcast over n_sample, act (B, n_sample, act_dim)
    act_mp = jax.random.normal(k_act_mp, (batch, n_sample, act_dim), jnp.float32)
    q_mp = qf(obs, act_mp, n_sample=n_sample)
    jax.block_until_ready(q_mp)
    assert q_mp.shape == (batch, n_sample), q_mp.shape
    ref_mp = _reference_q(obs, act_mp, qf.weights, qf.biases, qf.activation,
                          n_sample)
    assert jnp.allclose(q_mp, ref_mp, atol=5e-2, rtol=5e-2), (q_mp, ref_mp)

    # 3) multi-tile + ragged last tile: 2*150 = 300 rows with tile_m=256
    #    (exercises the pipelined grid, resident weights, and ragged handling).
    qf2 = MLPQFunctionPallas(obs_dim=obs_dim, act_dim=act_dim,
                             hidden_sizes=hidden, key=k_init, tile_m=256)
    ns2 = 150
    obs2 = jax.random.normal(k_obs2, (batch, obs_dim), jnp.float32)
    act2 = jax.random.normal(k_act2, (batch, ns2, act_dim), jnp.float32)
    q2 = qf2(obs2, act2, n_sample=ns2)
    jax.block_until_ready(q2)
    assert q2.shape == (batch, ns2), q2.shape
    ref2 = _reference_q(obs2, act2, qf2.weights, qf2.biases, qf2.activation, ns2)
    assert jnp.allclose(q2, ref2, atol=5e-2, rtol=5e-2), float(jnp.abs(q2 - ref2).max())

    print("KERNEL_OK")
</pallas_src>

<mosaic_0001>
module attributes {stable_mosaic.version = 11 : i64} {
  func.func @kernel(%arg0: i32, %arg1: memref<2x12xf32, #tpu.memory_space<vmem>>, %arg2: memref<12x32xbf16, #tpu.memory_space<vmem>>, %arg3: memref<1x32xf32, #tpu.memory_space<vmem>>, %arg4: memref<32x32xbf16, #tpu.memory_space<vmem>>, %arg5: memref<1x32xf32, #tpu.memory_space<vmem>>, %arg6: memref<1x32xbf16, #tpu.memory_space<vmem>>, %arg7: memref<1x1xf32, #tpu.memory_space<vmem>>, %arg8: memref<1x2xf32, #tpu.memory_space<vmem>>) attributes {dimension_semantics = [#tpu.dimension_semantics<parallel>], iteration_bounds = array<i64: 1>, scalar_prefetch = 0 : i64, scratch_operands = 0 : i64, tpu.core_type = #tpu.core_type<tc>, window_params = [{transform_indices = @transform_0, window_bounds = array<i64: 2, 12>}, {pipeline_mode = #tpu.pipeline_mode<synchronous>, transform_indices = @transform_1, window_bounds = array<i64: 12, 32>}, {pipeline_mode = #tpu.pipeline_mode<synchronous>, transform_indices = @transform_2, window_bounds = array<i64: 1, 32>}, {pipeline_mode = #tpu.pipeline_mode<synchronous>, transform_indices = @transform_3, window_bounds = array<i64: 32, 32>}, {pipeline_mode = #tpu.pipeline_mode<synchronous>, transform_indices = @transform_4, window_bounds = array<i64: 1, 32>}, {pipeline_mode = #tpu.pipeline_mode<synchronous>, transform_indices = @transform_5, window_bounds = array<i64: 1, 32>}, {pipeline_mode = #tpu.pipeline_mode<synchronous>, transform_indices = @transform_6, window_bounds = array<i64: 1, 1>}, {transform_indices = @transform_7, window_bounds = array<i64: 1, 2>}]} {
    %c0 = arith.constant 0 : index
    %c0_0 = arith.constant 0 : index
    %0 = vector.load %arg1[%c0, %c0_0] : memref<2x12xf32, #tpu.memory_space<vmem>>, vector<2x12xf32>
    %1 = arith.truncf %0 : vector<2x12xf32> to vector<2x12xbf16>
    %c0_1 = arith.constant 0 : index
    %c0_2 = arith.constant 0 : index
    %2 = vector.load %arg2[%c0_1, %c0_2] : memref<12x32xbf16, #tpu.memory_space<vmem>>, vector<12x32xbf16>
    %c0_3 = arith.constant 0 : index
    %c0_4 = arith.constant 0 : index
    %3 = vector.load %arg3[%c0_3, %c0_4] : memref<1x32xf32, #tpu.memory_space<vmem>>, vector<1x32xf32>
    %cst = arith.constant dense<0.000000e+00> : vector<2x32xf32>
    %4 = tpu.matmul %1, %2, %cst {dimension_numbers = #tpu.dot_dimension_numbers<[1], [0], [0], [1], [0, 0, 1, 1], [], []>} : vector<2x12xbf16>, vector<12x32xbf16>, vector<2x32xf32> -> vector<2x32xf32>
    %5 = vector.broadcast %3 : vector<1x32xf32> to vector<2x32xf32>
    %6 = arith.addf %4, %5 : vector<2x32xf32>
    %cst_5 = arith.constant 0.000000e+00 : f32
    %7 = vector.broadcast %cst_5 : f32 to vector<2x32xf32>
    %8 = arith.maximumf %6, %7 : vector<2x32xf32>
    %9 = arith.truncf %8 : vector<2x32xf32> to vector<2x32xbf16>
    %c0_6 = arith.constant 0 : index
    %c0_7 = arith.constant 0 : index
    %10 = vector.load %arg4[%c0_6, %c0_7] : memref<32x32xbf16, #tpu.memory_space<vmem>>, vector<32x32xbf16>
    %c0_8 = arith.constant 0 : index
    %c0_9 = arith.constant 0 : index
    %11 = vector.load %arg5[%c0_8, %c0_9] : memref<1x32xf32, #tpu.memory_space<vmem>>, vector<1x32xf32>
    %cst_10 = arith.constant dense<0.000000e+00> : vector<2x32xf32>
    %12 = tpu.matmul %9, %10, %cst_10 {dimension_numbers = #tpu.dot_dimension_numbers<[1], [0], [0], [1], [0, 0, 1, 1], [], []>} : vector<2x32xbf16>, vector<32x32xbf16>, vector<2x32xf32> -> vector<2x32xf32>
    %13 = vector.broadcast %11 : vector<1x32xf32> to vector<2x32xf32>
    %14 = arith.addf %12, %13 : vector<2x32xf32>
    %cst_11 = arith.constant 0.000000e+00 : f32
    %15 = vector.broadcast %cst_11 : f32 to vector<2x32xf32>
    %16 = arith.maximumf %14, %15 : vector<2x32xf32>
    %17 = arith.truncf %16 : vector<2x32xf32> to vector<2x32xbf16>
    %c0_12 = arith.constant 0 : index
    %c0_13 = arith.constant 0 : index
    %18 = vector.load %arg6[%c0_12, %c0_13] : memref<1x32xbf16, #tpu.memory_space<vmem>>, vector<1x32xbf16>
    %cst_14 = arith.constant dense<0.000000e+00> : vector<1x2xf32>
    %19 = tpu.matmul %18, %17, %cst_14 {dimension_numbers = #tpu.dot_dimension_numbers<[1], [1], [0], [0], [0, 0, 1, 0], [], []>} : vector<1x32xbf16>, vector<2x32xbf16>, vector<1x2xf32> -> vector<1x2xf32>
    %c0_15 = arith.constant 0 : index
    %c0_16 = arith.constant 0 : index
    %20 = vector.load %arg7[%c0_15, %c0_16] : memref<1x1xf32, #tpu.memory_space<vmem>>, vector<1x1xf32>
    %21 = vector.broadcast %20 : vector<1x1xf32> to vector<1x2xf32>
    %22 = arith.addf %19, %21 : vector<1x2xf32>
    %c0_17 = arith.constant 0 : index
    %c0_18 = arith.constant 0 : index
    %23 = vector.load %arg8[%c0_17, %c0_18] : memref<1x2xf32, #tpu.memory_space<vmem>>, vector<1x2xf32>
    tpu.vector_store %arg8[%c0_17, %c0_18], %22 {strides = array<i32>} : memref<1x2xf32, #tpu.memory_space<vmem>>, vector<1x2xf32>,
    return
  }
  func.func @transform_0(%arg0: i32) -> (i32, i32) {
    %c0_i32 = arith.constant 0 : i32
    %c0_i32_0 = arith.constant 0 : i32
    return %arg0, %c0_i32 : i32, i32
  }
  func.func @transform_1(%arg0: i32) -> (i32, i32) {
    %c0_i32 = arith.constant 0 : i32
    %c0_i32_0 = arith.constant 0 : i32
    %c0_i32_1 = arith.constant 0 : i32
    return %c0_i32, %c0_i32_0 : i32, i32
  }
  func.func @transform_2(%arg0: i32) -> (i32, i32) {
    %c0_i32 = arith.constant 0 : i32
    %c0_i32_0 = arith.constant 0 : i32
    %c0_i32_1 = arith.constant 0 : i32
    return %c0_i32, %c0_i32_0 : i32, i32
  }
  func.func @transform_3(%arg0: i32) -> (i32, i32) {
    %c0_i32 = arith.constant 0 : i32
    %c0_i32_0 = arith.constant 0 : i32
    %c0_i32_1 = arith.constant 0 : i32
    return %c0_i32, %c0_i32_0 : i32, i32
  }
  func.func @transform_4(%arg0: i32) -> (i32, i32) {
    %c0_i32 = arith.constant 0 : i32
    %c0_i32_0 = arith.constant 0 : i32
    %c0_i32_1 = arith.constant 0 : i32
    return %c0_i32, %c0_i32_0 : i32, i32
  }
  func.func @transform_5(%arg0: i32) -> (i32, i32) {
    %c0_i32 = arith.constant 0 : i32
    %c0_i32_0 = arith.constant 0 : i32
    %c0_i32_1 = arith.constant 0 : i32
    return %c0_i32, %c0_i32_0 : i32, i32
  }
  func.func @transform_6(%arg0: i32) -> (i32, i32) {
    %c0_i32 = arith.constant 0 : i32
    %c0_i32_0 = arith.constant 0 : i32
    %c0_i32_1 = arith.constant 0 : i32
    return %c0_i32, %c0_i32_0 : i32, i32
  }
  func.func @transform_7(%arg0: i32) -> (i32, i32) {
    %c0_i32 = arith.constant 0 : i32
    %c0_i32_0 = arith.constant 0 : i32
    return %c0_i32, %arg0 : i32, i32
  }
}

</mosaic_0001>

<bundles_post_ra>
// kernel: tpu_custom_call.1
= control target key start
LH: loop header
LB: loop body
LE: loop exit
PB: predicated region body
PF: predicated region fallthrough
CT: control target
= control target key end

     0   :  { %s489_s0 = inlined_call_operand.vmem [shape: f32[2,12], index: 0, kind: input, shape index: {}]   ;;  %s490_s1 = inlined_call_operand.hbm [shape: bf16[12,32], index: 1, kind: input, shape index: {}]   ;;  %s491_s2 = inlined_call_operand.vmem [shape: f32[1,32], index: 2, kind: input, shape index: {}]   ;;  %s492_s3 = inlined_call_operand.hbm [shape: bf16[32,32], index: 3, kind: input, shape index: {}]   ;;  %s493_s4 = inlined_call_operand.vmem [shape: f32[1,32], index: 4, kind: input, shape index: {}]   ;;  %s494_s5 = inlined_call_operand.vmem [shape: bf16[1,32], index: 5, kind: input, shape index: {}]   ;;  %s495_s6 = inlined_call_operand.<no memory space> [shape: f32[1,1], index: 6, kind: input, shape index: {}]   ;;  %s496_s7 = inlined_call_operand.hbm [shape: f32[1,2], index: 7, kind: output, shape index: {}]  }
   0x1   :  { %v12_v0 = vstv %s495_s6 }
   0x2   :  { %13 = vst [vmem:[#allocation2] sm:$0x1] %v12_v0 }
   0x3   :  { %14 = vsyncpa [#allocation4], 0 }
   0x4   :  { %15 = vsyncpa [#allocation7], 0 }
   0x5   :  { %16 = vsyncpa [#allocation5], 0  ;;  %s387_s26 = smov [#allocation3]   ;;  %s315_s30 = scalar_lea.hbm %s490_s1, 128 }
   0x6   :  { %s24_s27 = sshll.u32 %s387_s26, 4  ;;  %p316_p0 = scmp.ne.s32.totalorder %s490_s1, %s315_s30  ;;  %s25_s27 = int_to_ptr.vmem [resolvable:$true] %s24_s27 }
   0x7   :  { %p319_p1 = scmp.lt.u32.totalorder %s315_s30, %s490_s1 }
   0x9   :  { %p321_p2 = pnand %p319_p1, %p316_p0 }
   0xb   :  { %324 = shalt.err (!%p321_p2)
}
   0xc   :  { %s325_s6 = scalar_lea.vmem %s25_s27, 128  ;;  %p330_p4 = scmp.lt.s32.totalorder %s25_s27, %s25_s27 }
   0xd   :  { %p326_p3 = scmp.ne.s32.totalorder %s25_s27, %s325_s6  ;;  %p331_p5 = scmp.lt.s32.totalorder %s325_s6, %s325_s6 }
   0xf   :  { %p332_p6 = por %p331_p5, %p330_p4 }
  0x11   :  { %p333_p7 = pnand %p332_p6, %p326_p3 }
  0x13   :  { %336 = shalt.err (!%p333_p7)
}
  0x14   :  { %s388_s12 = smov 64   ;;  %s389_s13 = smov 4  }
  0x15   :  { %30 = dma.hbm_to_vmem [thread:$0]  %s490_s1, 128, %s25_s27, [#allocation4], %s388_s12, %s388_s12, %s389_s13  }
  0x16   :  { %s390_s16 = smov [#allocation6]   ;;  %s337_s20 = scalar_lea.hbm %s492_s3, 256 }
  0x17   :  { %s38_s17 = sshll.u32 %s390_s16, 4  ;;  %p338_p8 = scmp.ne.s32.totalorder %s492_s3, %s337_s20  ;;  %s39_s17 = int_to_ptr.vmem [resolvable:$true] %s38_s17 }
  0x18   :  { %p341_p9 = scmp.lt.u32.totalorder %s337_s20, %s492_s3 }
  0x1a   :  { %p343_p10 = pnand %p341_p9, %p338_p8 }
  0x1c   :  { %346 = shalt.err (!%p343_p10)
}
  0x1d   :  { %s347_s25 = scalar_lea.vmem %s39_s17, 256  ;;  %p352_p12 = scmp.lt.s32.totalorder %s39_s17, %s39_s17 }
  0x1e   :  { %p348_p11 = scmp.ne.s32.totalorder %s39_s17, %s347_s25  ;;  %p353_p13 = scmp.lt.s32.totalorder %s347_s25, %s347_s25 }
  0x20   :  { %p354_p0 = por %p353_p13, %p352_p12 }
  0x22   :  { %p355_p1 = pnand %p354_p0, %p348_p11 }
  0x24   :  { %358 = shalt.err (!%p355_p1)
}
  0x25   :  { %44 = dma.hbm_to_vmem [thread:$0]  %s492_s3, 256, %s39_s17, [#allocation7], %s388_s12, %s388_s12, %s389_s13  }
  0x26   :  { %381 = dma.done.wait [#allocation4], 128  }
  0x27   :  { %382 = vsyncadd [#allocation4], 4294967168 }
  0x28   :  { %383 = dma.done.wait [#allocation7], 256  }
  0x29   :  { %384 = vsyncadd [#allocation7], 4294967040  ;;  %v391_v1 = vmov 0.0   ;;  %vm392_vm0 = vmmov 0   ;;  %vm78_vm1 = vcmask 1045504   ;;  %vm74_vm2 = vcmask 97280  }
  0x2a   :  { %283 = vmatprep.subr.bf16.mxu0 %v391_v1  ;;  %285 = vmatprep.mubr.msk.bf16.mxu0 %vm392_vm0, %v391_v1  ;;  %v312_v2 = vld [vmem:[#allocation3] sm:$0x3f]   ;;  %v313_v6 = vld [vmem:[#allocation6] sm:$0xff]   ;;  %v314_v7 = vld [vmem:[#allocation6 + $0x8] sm:$0xff]   ;;  %vm147_vm3 = vcmask 261120   ;;  %v393_v17 = vmov 0   ;;  %v200_v28 = vlaneseq }
  0x2b   :  { %289 = vmatprep.subr.bf16.mxu1 %v391_v1  ;;  %293 = vmatprep.mubr.msk.bf16.mxu1 %vm392_vm0, %v391_v1  ;;  %v58_v3 = vld [vmem:[%s489_s0] sm:$0x3]  ;;  %v80_v4 = vsel %vm78_vm1, %v312_v2, 0  ;;  %vm250_vm4 = vcmask 8192  }
  0x2c   :  { %v59_v5 = vpack.c.bf16 %v58_v3, %v58_v3  ;;  %284 = vmatpush3.bf16.msra.mxu0 %v80_v4  ;;  %290 = vmatpush3.bf16.msra.mxu1 %v313_v6  ;;  %v268_v8 = vld [vmem:[%s491_s2] ss:$0 sm:$0xff]  ;;  %v201_v29 = vshrl.u32 %v200_v28, 7 }
  0x2d   :  { %297 = vmatprep.subr.bf16.mxu0 %v391_v1  ;;  %291 = vmatprep.subr.bf16.mxu1 %v391_v1  ;;  %v194_v16 = vld [vmem:[#allocation2] sm:$0x1] }
  0x2e   :  { %311 = vset.pattern.permute.xlu0 %v393_v17  ;;  %v271_v18 = vld [vmem:[%s493_s4] ss:$0 sm:$0xff]  ;;  %v202_v30 = vsub.s32 0, %v201_v29  ;;  %s394_s4 = smov [#allocation8]  }
  0x2f   :  { %286 = vmatmul.mubr.msk.bf16.vlgmr.msra.gmra.mrb[0].mxu0 %vm74_vm2, %v59_v5  ;;  %197 = vperm.xlu0 %311, %v194_v16   ;;  %v193_v27 = vld [vmem:[%s494_s5] sm:$0x1]  ;;  %s258_s9 = sshll.u32 %s394_s4, 4  ;;  %s259_s9 = int_to_ptr.vmem [resolvable:$true] %s258_s9 }
  0x30   :  { %299 = vmatprep.mubr.msk.bf16.mxu0 %vm392_vm0, %v391_v1  ;;  %292 = vmatpush3.bf16.msra.mxu1 %v314_v7  ;;  %s359_s10 = scalar_lea.vmem %s259_s9, 16  ;;  %s363_s5 = scalar_lea.vmem %s259_s9, 32 }
  0x31   :  { %p360_p2 = scmp.ne.s32.totalorder %s259_s9, %s359_s10  ;;  %p364_p3 = scmp.lt.s32.totalorder %s259_s9, %s259_s9 }
  0x32   :  { %p365_p4 = scmp.lt.s32.totalorder %s363_s5, %s359_s10 }
  0x34   :  { %p366_p5 = por %p365_p4, %p364_p3 }
  0x36   :  { %p367_p6 = pnand %p366_p5, %p360_p2 }
  0xae   :  { %v198_v31 = vpop.permute.xlu0 %197 }
  0xaf   :  { %v203_v32 = vrot.slane %v198_v31, %v202_v30 }
 0x102   :  { %v116_v9 = vpop.f32.mrb[0].mxu0 }
 0x103   :  { %v117_v10 = vadd.f32 %v268_v8, %v116_v9  ;;  %v287_v11 = vpop.f32.mrb[1].mxu0 }
 0x104   :  { %v119_v12 = vpop.f32.mrb[2].mxu0 }
 0x105   :  { %v122_v13 = vmax.f32 %v117_v10, 0.0  ;;  %v288_v14 = vpop.f32.mrb[3].mxu0 }
 0x107   :  { %v123_v15 = vpack.c.bf16 %v122_v13, %v122_v13 }
 0x109   :  { %294 = vmatmul.mubr.msk.bf16.vlgmr.msra.gmra.mrb[0].mxu1 %vm147_vm3, %v123_v15 }
 0x1dc   :  { %v185_v19 = vpop.f32.mrb[0].mxu1 }
 0x1dd   :  { %v186_v20 = vadd.f32 %v271_v18, %v185_v19  ;;  %v295_v21 = vpop.f32.mrb[1].mxu1 }
 0x1de   :  { %v188_v22 = vpop.f32.mrb[2].mxu1 }
 0x1df   :  { %v191_v23 = vmax.f32 %v186_v20, 0.0  ;;  %v296_v24 = vpop.f32.mrb[3].mxu1 }
 0x1e1   :  { %v192_v25 = vpack.c.bf16 %v191_v23, %v191_v23 }
 0x1e3   :  { %v208_v26 = vsel %vm147_vm3, %v192_v25, 0 }
 0x1e4   :  { %298 = vmatpush3.bf16.xpose.msra.mxu0 %v208_v26 }
 0x1eb   :  { %300 = vmatmul.mubr.msk.bf16.vlgmr.msra.gmra.mrb[4].mxu0 %vm147_vm3, %v193_v27 }
 0x2be   :  { %v244_v33 = vpop.f32.mrb[4].mxu0 }
 0x2bf   :  { %v245_v34 = vadd.f32 %v244_v33, %v203_v32  ;;  %v301_v35 = vpop.f32.mrb[5].mxu0 }
 0x2c0   :  { %v247_v36 = vpop.f32.mrb[6].mxu0 }
 0x2c1   :  { %v302_v37 = vpop.f32.mrb[7].mxu0  ;;  %251 = vst.msk [vmem:[#allocation8] sm:$0x1] %vm250_vm4, %v245_v34 }
 0x2c2   :  { %370 = shalt.err (!%p367_p6)
}
 0x2c3   :  { %s371_s12 = scalar_lea.hbm %s496_s7, 16 }
 0x2c4   :  { %p372_p7 = scmp.ne.s32.totalorder %s496_s7, %s371_s12  ;;  %p375_p8 = scmp.lt.u32.totalorder %s371_s12, %s496_s7 }
 0x2c6   :  { %p377_p9 = pnand %p375_p8, %p372_p7 }
 0x2c8   :  { %380 = shalt.err (!%p377_p9)
}
 0x2c9   :  { %261 = dma.vmem_to_hbm [thread:$0]  %s259_s9, 16, %s496_s7, [#allocation5]  }
 0x2ca   :  { %385 = dma.done.wait [#allocation5], 16  }
 0x2cb   :  { %386 = vsyncadd [#allocation5], 4294967280 }
 0x2cc   :  { %265 = vsyncpa [#allocation4], 1 }
 0x2cd   :  { %266 = vsyncpa [#allocation7], 1 }
 0x2ce   :  { %267 = vsyncpa [#allocation5], 1 }

</bundles_post_ra>
